<compile_context>
chip_gen: v5e
topology: v5e:2x2
jax: 0.10.0
libtpu: 0.0.40
codegen_flags: <defaults>
</compile_context>

<pallas_src>
import functools

import jax
import jax.numpy as jnp
import numpy as np
from jax.experimental import pallas as pl
from jax.experimental.pallas import tpu as pltpu


def _round_up(x, m):
    return (x + m - 1) // m * m


def joint_loss_kernel(f_ref, lab_ref, sim_ref, agents_ref, asq_ref, o_ref,
                      *, margin, sim_margin):
    f_bf = f_ref[...]                     # (TR, Dp) bf16 rows (source+target, padded)
    a_bf = agents_ref[...]                # (Cp, Dp) bf16 agents, VMEM-resident

    # Pairwise squared distances via a single MXU matmul (bf16 in, f32 accumulate):
    #   d[i, c] = ||f_i||^2 - 2 f_i . a_c + ||a_c||^2
    dot = jax.lax.dot_general(
        f_bf, a_bf,
        dimension_numbers=(((1,), (1,)), ((), ())),
        preferred_element_type=jnp.float32)                         # (TR, Cp)
    f32 = f_bf.astype(jnp.float32)
    f_sq = jnp.sum(f32 * f32, axis=1, keepdims=True)                # (TR, 1)
    a_sq = asq_ref[...]                                             # (1, Cp) f32 (hoisted)
    d = jnp.maximum(f_sq - 2.0 * dot + a_sq, 0.0)                   # (TR, Cp), clamp >= 0

    lab = lab_ref[...]                    # (TR, 1) int32, -1 for target / padded rows
    sim = sim_ref[...].astype(jnp.float32)                          # (TR, Cp)

    cls = jax.lax.broadcasted_iota(jnp.int32, d.shape, 1)           # (TR, Cp)
    is_lab = cls == lab                                             # one-hot label mask
    src = (lab >= 0).astype(jnp.float32)                            # (TR, 1) source flag

    # positive term: squared distance to own agent (source rows only; lab=-1 -> 0)
    pos = jnp.sum(jnp.where(is_lab, d, 0.0), axis=1, keepdims=True)  # (TR, 1)

    # hard negatives: similar agents, excluding the own-label column (fused mask)
    hard = jnp.logical_and(sim > sim_margin, jnp.logical_not(is_lab))   # (TR, Cp) bool
    n_hard = jnp.sum(hard.astype(jnp.float32), axis=1, keepdims=True)   # (TR, 1)
    hinge = jnp.where(hard, jnp.maximum(margin - d, 0.0), 0.0)          # (TR, Cp)
    neg_sum = jnp.sum(hinge, axis=1, keepdims=True)                     # (TR, 1)
    has_neg = (n_hard > 0.0).astype(jnp.float32)                        # (TR, 1)
    neg_mean = jnp.where(n_hard > 0.0, neg_sum / jnp.maximum(n_hard, 1.0), 0.0)

    # per-tile partial numerator / denominator -> lane-dense output slab
    num = jnp.sum(pos + neg_mean)
    den = jnp.sum(src + has_neg)
    lane = jax.lax.broadcasted_iota(jnp.int32, (1, 8, 128), 2)
    o_ref[...] = jnp.where(lane == 0, num, jnp.where(lane == 1, den, 0.0))


def joint_loss(features, agents, labels, similarity,
               features_target, similarity_target, margin=1.0):
    margin = float(margin)
    sim_margin = 1.0 - margin / 2.0

    features = jnp.asarray(features, jnp.float32)
    agents = jnp.asarray(agents, jnp.float32)
    labels = jnp.asarray(labels, jnp.int32)
    similarity = jnp.asarray(similarity, jnp.float32)
    features_target = jnp.asarray(features_target, jnp.float32)
    similarity_target = jnp.asarray(similarity_target, jnp.float32)

    B, D = features.shape
    C = agents.shape[0]
    B2 = features_target.shape[0]
    R = B + B2

    # lane-dense padding for class / feature axes, fixed MXU-friendly row tile
    Cp = _round_up(C, 128)
    Dp = _round_up(D, 128)
    TR = min(256, _round_up(max(R, 1), 8))
    Rp = _round_up(max(R, 1), TR)
    pad_r = Rp - R

    # ---- glue (plain JAX): unify source + target rows into one padded problem ----
    f_all = jnp.concatenate([features, features_target], axis=0)            # (R, D)
    s_all = jnp.concatenate([similarity, similarity_target], axis=0)        # (R, C)
    lab_all = jnp.concatenate([labels, jnp.full((B2,), -1, jnp.int32)], axis=0)

    f_all = jnp.pad(f_all, ((0, pad_r), (0, Dp - D))).astype(jnp.bfloat16)
    # padded similarity entries get a huge negative value -> never "hard"
    s_all = jnp.pad(s_all, ((0, pad_r), (0, Cp - C)),
                    constant_values=-1e9).astype(jnp.bfloat16)
    lab_all = jnp.pad(lab_all, (0, pad_r), constant_values=-1).reshape(Rp, 1)

    agents_p = jnp.pad(agents, ((0, Cp - C), (0, Dp - D)))                   # (Cp, Dp) f32
    a_sq = jnp.sum(agents_p * agents_p, axis=1, keepdims=True).T             # (1, Cp) f32
    agents_bf = agents_p.astype(jnp.bfloat16)                                # (Cp, Dp) bf16

    n_tiles = Rp // TR
    kernel = functools.partial(joint_loss_kernel,
                               margin=margin, sim_margin=sim_margin)

    partial_out = pl.pallas_call(
        kernel,
        out_shape=jax.ShapeDtypeStruct((n_tiles, 8, 128), jnp.float32),
        grid_spec=pltpu.PrefetchScalarGridSpec(
            num_scalar_prefetch=0,
            grid=(n_tiles,),
            in_specs=[
                pl.BlockSpec((TR, Dp), lambda t: (t, 0)),    # feature rows (bf16)
                pl.BlockSpec((TR, 1), lambda t: (t, 0)),     # labels (-1 = no label)
                pl.BlockSpec((TR, Cp), lambda t: (t, 0)),    # similarity rows (bf16)
                pl.BlockSpec((Cp, Dp), lambda t: (0, 0)),    # agents, VMEM-resident
                pl.BlockSpec((1, Cp), lambda t: (0, 0)),     # ||a||^2, hoisted
            ],
            out_specs=pl.BlockSpec((1, 8, 128), lambda t: (t, 0, 0)),
        ),
        compiler_params=pltpu.CompilerParams(
            dimension_semantics=("parallel",),              # independent row tiles
            vmem_limit_bytes=48 * 1024 * 1024),
    )(f_all, lab_all, s_all, agents_bf, a_sq)

    num = jnp.sum(partial_out[:, 0, 0])
    den = jnp.sum(partial_out[:, 0, 1])
    # guard: empty term list (no source rows, no hard negatives) -> 0 instead of NaN
    return jnp.where(den > 0.0, num / den, jnp.float32(0.0))


def reference_joint_loss(features, agents, labels, similarity,
                         features_target, similarity_target, margin=1.0):
    """Pure-numpy mirror of the PyTorch module (eval semantics)."""
    sim_margin = 1.0 - margin / 2.0
    f = np.asarray(features, np.float64)
    a = np.asarray(agents, np.float64)
    lab = np.asarray(labels)
    s = np.asarray(similarity, np.float64)
    ft = np.asarray(features_target, np.float64)
    st = np.asarray(similarity_target, np.float64)
    n_class = a.shape[0]
    ar = np.arange(n_class)
    terms = []
    for i in range(f.shape[0]):
        fi, li, si = f[i], int(lab[i]), s[i]
        terms.append(((fi - a[li]) ** 2).sum())
        hard = (ar != li) & (si > sim_margin)
        if hard.any():
            dist = ((fi - a[hard]) ** 2).sum(axis=1)
            terms.append(np.maximum(0.0, margin - dist).mean())
    for j in range(ft.shape[0]):
        fj, sj = ft[j], st[j]
        hard = sj > sim_margin
        if hard.any():
            dist = ((fj - a[hard]) ** 2).sum(axis=1)
            terms.append(np.maximum(0.0, margin - dist).mean())
    return float(np.mean(np.asarray(terms)))


if __name__ == "__main__":
    B, B2, n_class, dim = 4, 4, 8, 32
    margin = 1.0

    key = jax.random.PRNGKey(0)
    kf, ka, kl, ks, kft, kst = jax.random.split(key, 6)

    # small-magnitude features/agents so squared distances land around the hinge
    features = 0.1 * jax.random.normal(kf, (B, dim), jnp.float32)
    agents = 0.1 * jax.random.normal(ka, (n_class, dim), jnp.float32)
    labels = jax.random.randint(kl, (B,), 0, n_class, dtype=jnp.int32)
    # similarities are quantized to the bf16 grid so the kernel's bf16 similarity
    # stream and the reference agree exactly on threshold membership
    similarity = jax.random.uniform(ks, (B, n_class), jnp.float32)
    similarity = similarity.astype(jnp.bfloat16).astype(jnp.float32)
    features_target = 0.1 * jax.random.normal(kft, (B2, dim), jnp.float32)
    similarity_target = jax.random.uniform(kst, (B2, n_class), jnp.float32)
    similarity_target = similarity_target.astype(jnp.bfloat16).astype(jnp.float32)
    # one target row with no hard negatives -> exercises the skipped-term branch
    similarity_target = similarity_target.at[0].set(0.1)

    out = joint_loss(features, agents, labels, similarity,
                     features_target, similarity_target, margin=margin)
    out = jax.block_until_ready(out)

    ref = reference_joint_loss(features, agents, labels, similarity,
                               features_target, similarity_target, margin=margin)

    assert out.shape == ()
    # bf16 matmul / feature stream -> small numerical difference vs f64 reference
    assert abs(float(out) - ref) < 3e-3, (float(out), ref)
    print("KERNEL_OK")
</pallas_src>

<mosaic_0001>
module attributes {stable_mosaic.version = 11 : i64} {
  func.func @joint_loss_kernel(%arg0: i32, %arg1: memref<8x128xbf16, #tpu.memory_space<vmem>>, %arg2: memref<8x1xi32, #tpu.memory_space<vmem>>, %arg3: memref<8x128xbf16, #tpu.memory_space<vmem>>, %arg4: memref<128x128xbf16, #tpu.memory_space<vmem>>, %arg5: memref<1x128xf32, #tpu.memory_space<vmem>>, %arg6: memref<1x8x128xf32, #tpu.memory_space<vmem>>) attributes {dimension_semantics = [#tpu.dimension_semantics<parallel>], iteration_bounds = array<i64: 1>, scalar_prefetch = 0 : i64, scratch_operands = 0 : i64, tpu.core_type = #tpu.core_type<tc>, window_params = [{transform_indices = @transform_0, window_bounds = array<i64: 8, 128>}, {transform_indices = @transform_1, window_bounds = array<i64: 8, 1>}, {transform_indices = @transform_2, window_bounds = array<i64: 8, 128>}, {pipeline_mode = #tpu.pipeline_mode<synchronous>, transform_indices = @transform_3, window_bounds = array<i64: 128, 128>}, {pipeline_mode = #tpu.pipeline_mode<synchronous>, transform_indices = @transform_4, window_bounds = array<i64: 1, 128>}, {transform_indices = @transform_5, window_bounds = array<i64: 1, 8, 128>}]} {
    %c0 = arith.constant 0 : index
    %c0_0 = arith.constant 0 : index
    %0 = vector.load %arg1[%c0, %c0_0] : memref<8x128xbf16, #tpu.memory_space<vmem>>, vector<8x128xbf16>
    %c0_1 = arith.constant 0 : index
    %c0_2 = arith.constant 0 : index
    %1 = vector.load %arg4[%c0_1, %c0_2] : memref<128x128xbf16, #tpu.memory_space<vmem>>, vector<128x128xbf16>
    %cst = arith.constant dense<0.000000e+00> : vector<8x128xf32>
    %2 = tpu.matmul %0, %1, %cst {dimension_numbers = #tpu.dot_dimension_numbers<[1], [1], [0], [0], [0, 0, 1, 0], [], []>} : vector<8x128xbf16>, vector<128x128xbf16>, vector<8x128xf32> -> vector<8x128xf32>
    %3 = arith.extf %0 : vector<8x128xbf16> to vector<8x128xf32>
    %4 = arith.mulf %3, %3 : vector<8x128xf32>
    %cst_3 = arith.constant dense<0.000000e+00> : vector<8xf32>
    %5 = vector.multi_reduction <add>, %4, %cst_3 [1] : vector<8x128xf32> to vector<8xf32>
    %6 = vector.shape_cast %5 : vector<8xf32> to vector<8x1xf32>
    %c0_4 = arith.constant 0 : index
    %c0_5 = arith.constant 0 : index
    %7 = vector.load %arg5[%c0_4, %c0_5] : memref<1x128xf32, #tpu.memory_space<vmem>>, vector<1x128xf32>
    %cst_6 = arith.constant 2.000000e+00 : f32
    %8 = vector.broadcast %cst_6 : f32 to vector<8x128xf32>
    %9 = arith.mulf %8, %2 : vector<8x128xf32>
    %10 = vector.broadcast %6 : vector<8x1xf32> to vector<8x128xf32>
    %11 = arith.subf %10, %9 : vector<8x128xf32>
    %12 = vector.broadcast %7 : vector<1x128xf32> to vector<8x128xf32>
    %13 = arith.addf %11, %12 : vector<8x128xf32>
    %cst_7 = arith.constant 0.000000e+00 : f32
    %14 = vector.broadcast %cst_7 : f32 to vector<8x128xf32>
    %15 = arith.maximumf %13, %14 : vector<8x128xf32>
    %c0_8 = arith.constant 0 : index
    %c0_9 = arith.constant 0 : index
    %16 = vector.load %arg2[%c0_8, %c0_9] : memref<8x1xi32, #tpu.memory_space<vmem>>, vector<8x1xi32>
    %c0_10 = arith.constant 0 : index
    %c0_11 = arith.constant 0 : index
    %17 = vector.load %arg3[%c0_10, %c0_11] : memref<8x128xbf16, #tpu.memory_space<vmem>>, vector<8x128xbf16>
    %18 = arith.extf %17 : vector<8x128xbf16> to vector<8x128xf32>
    %19 = tpu.iota {dimensions = array<i32: 1>} : vector<8x128xi32>
    %20 = vector.broadcast %16 : vector<8x1xi32> to vector<8x128xi32>
    %21 = arith.cmpi eq, %19, %20 : vector<8x128xi32>
    %c0_i32 = arith.constant 0 : i32
    %22 = vector.broadcast %c0_i32 : i32 to vector<8x1xi32>
    %23 = arith.cmpi sge, %16, %22 : vector<8x1xi32>
    %24 = arith.extui %23 : vector<8x1xi1> to vector<8x1xi32>
    %25 = arith.sitofp %24 : vector<8x1xi32> to vector<8x1xf32>
    %cst_12 = arith.constant 0.000000e+00 : f32
    %26 = vector.broadcast %cst_12 : f32 to vector<8x128xf32>
    %27 = arith.select %21, %15, %26 : vector<8x128xi1>, vector<8x128xf32>
    %cst_13 = arith.constant dense<0.000000e+00> : vector<8xf32>
    %28 = vector.multi_reduction <add>, %27, %cst_13 [1] : vector<8x128xf32> to vector<8xf32>
    %29 = vector.shape_cast %28 : vector<8xf32> to vector<8x1xf32>
    %cst_14 = arith.constant 5.000000e-01 : f32
    %30 = vector.broadcast %cst_14 : f32 to vector<8x128xf32>
    %31 = arith.cmpf ogt, %18, %30 : vector<8x128xf32>
    %cst_15 = arith.constant dense<true> : vector<8x128xi1>
    %32 = arith.xori %21, %cst_15 : vector<8x128xi1>
    %33 = arith.andi %31, %32 : vector<8x128xi1>
    %34 = arith.extui %33 : vector<8x128xi1> to vector<8x128xi32>
    %35 = arith.sitofp %34 : vector<8x128xi32> to vector<8x128xf32>
    %cst_16 = arith.constant dense<0.000000e+00> : vector<8xf32>
    %36 = vector.multi_reduction <add>, %35, %cst_16 [1] : vector<8x128xf32> to vector<8xf32>
    %37 = vector.shape_cast %36 : vector<8xf32> to vector<8x1xf32>
    %cst_17 = arith.constant 1.000000e+00 : f32
    %38 = vector.broadcast %cst_17 : f32 to vector<8x128xf32>
    %39 = arith.subf %38, %15 : vector<8x128xf32>
    %cst_18 = arith.constant 0.000000e+00 : f32
    %40 = vector.broadcast %cst_18 : f32 to vector<8x128xf32>
    %41 = arith.maximumf %39, %40 : vector<8x128xf32>
    %cst_19 = arith.constant 0.000000e+00 : f32
    %42 = vector.broadcast %cst_19 : f32 to vector<8x128xf32>
    %43 = arith.select %33, %41, %42 : vector<8x128xi1>, vector<8x128xf32>
    %cst_20 = arith.constant dense<0.000000e+00> : vector<8xf32>
    %44 = vector.multi_reduction <add>, %43, %cst_20 [1] : vector<8x128xf32> to vector<8xf32>
    %45 = vector.shape_cast %44 : vector<8xf32> to vector<8x1xf32>
    %cst_21 = arith.constant 0.000000e+00 : f32
    %46 = vector.broadcast %cst_21 : f32 to vector<8x1xf32>
    %47 = arith.cmpf ogt, %37, %46 : vector<8x1xf32>
    %48 = arith.extui %47 : vector<8x1xi1> to vector<8x1xi32>
    %49 = arith.sitofp %48 : vector<8x1xi32> to vector<8x1xf32>
    %cst_22 = arith.constant 0.000000e+00 : f32
    %50 = vector.broadcast %cst_22 : f32 to vector<8x1xf32>
    %51 = arith.cmpf ogt, %37, %50 : vector<8x1xf32>
    %cst_23 = arith.constant 1.000000e+00 : f32
    %52 = vector.broadcast %cst_23 : f32 to vector<8x1xf32>
    %53 = arith.maximumf %37, %52 : vector<8x1xf32>
    %54 = arith.divf %45, %53 : vector<8x1xf32>
    %cst_24 = arith.constant 0.000000e+00 : f32
    %55 = vector.broadcast %cst_24 : f32 to vector<8x1xf32>
    %56 = arith.select %51, %54, %55 : vector<8x1xi1>, vector<8x1xf32>
    %57 = arith.addf %29, %56 : vector<8x1xf32>
    %58 = vector.shape_cast %57 : vector<8x1xf32> to vector<1x8x1xf32>
    %cst_25 = arith.constant dense<0.000000e+00> : vector<1xf32>
    %59 = vector.multi_reduction <add>, %58, %cst_25 [1, 2] : vector<1x8x1xf32> to vector<1xf32>
    %60 = vector.shape_cast %59 : vector<1xf32> to vector<1x1x1xf32>
    %61 = vector.extract %60[0, 0, 0] : f32 from vector<1x1x1xf32>
    %62 = arith.addf %25, %49 : vector<8x1xf32>
    %63 = vector.shape_cast %62 : vector<8x1xf32> to vector<1x8x1xf32>
    %cst_26 = arith.constant dense<0.000000e+00> : vector<1xf32>
    %64 = vector.multi_reduction <add>, %63, %cst_26 [1, 2] : vector<1x8x1xf32> to vector<1xf32>
    %65 = vector.shape_cast %64 : vector<1xf32> to vector<1x1x1xf32>
    %66 = vector.extract %65[0, 0, 0] : f32 from vector<1x1x1xf32>
    %67 = tpu.iota {dimensions = array<i32: 2>} : vector<1x8x128xi32>
    %c0_i32_27 = arith.constant 0 : i32
    %68 = vector.broadcast %c0_i32_27 : i32 to vector<1x8x128xi32>
    %69 = arith.cmpi eq, %67, %68 : vector<1x8x128xi32>
    %c1_i32 = arith.constant 1 : i32
    %70 = vector.broadcast %c1_i32 : i32 to vector<1x8x128xi32>
    %71 = arith.cmpi eq, %67, %70 : vector<1x8x128xi32>
    %cst_28 = arith.constant 0.000000e+00 : f32
    %72 = vector.broadcast %66 : f32 to vector<1x8x128xf32>
    %73 = vector.broadcast %cst_28 : f32 to vector<1x8x128xf32>
    %74 = arith.select %71, %72, %73 : vector<1x8x128xi1>, vector<1x8x128xf32>
    %75 = vector.broadcast %61 : f32 to vector<1x8x128xf32>
    %76 = arith.select %69, %75, %74 : vector<1x8x128xi1>, vector<1x8x128xf32>
    %c0_29 = arith.constant 0 : index
    %c0_30 = arith.constant 0 : index
    %c0_31 = arith.constant 0 : index
    %77 = vector.load %arg6[%c0_29, %c0_30, %c0_31] : memref<1x8x128xf32, #tpu.memory_space<vmem>>, vector<1x8x128xf32>
    tpu.vector_store %arg6[%c0_29, %c0_30, %c0_31], %76 {strides = array<i32>} : memref<1x8x128xf32, #tpu.memory_space<vmem>>, vector<1x8x128xf32>,
    return
  }
  func.func @transform_0(%arg0: i32) -> (i32, i32) {
    %c0_i32 = arith.constant 0 : i32
    %c0_i32_0 = arith.constant 0 : i32
    return %arg0, %c0_i32 : i32, i32
  }
  func.func @transform_1(%arg0: i32) -> (i32, i32) {
    %c0_i32 = arith.constant 0 : i32
    %c0_i32_0 = arith.constant 0 : i32
    return %arg0, %c0_i32 : i32, i32
  }
  func.func @transform_2(%arg0: i32) -> (i32, i32) {
    %c0_i32 = arith.constant 0 : i32
    %c0_i32_0 = arith.constant 0 : i32
    return %arg0, %c0_i32 : i32, i32
  }
  func.func @transform_3(%arg0: i32) -> (i32, i32) {
    %c0_i32 = arith.constant 0 : i32
    %c0_i32_0 = arith.constant 0 : i32
    %c0_i32_1 = arith.constant 0 : i32
    return %c0_i32, %c0_i32_0 : i32, i32
  }
  func.func @transform_4(%arg0: i32) -> (i32, i32) {
    %c0_i32 = arith.constant 0 : i32
    %c0_i32_0 = arith.constant 0 : i32
    %c0_i32_1 = arith.constant 0 : i32
    return %c0_i32, %c0_i32_0 : i32, i32
  }
  func.func @transform_5(%arg0: i32) -> (i32, i32, i32) {
    %c0_i32 = arith.constant 0 : i32
    %c0_i32_0 = arith.constant 0 : i32
    %c0_i32_1 = arith.constant 0 : i32
    return %arg0, %c0_i32, %c0_i32_0 : i32, i32, i32
  }
}

</mosaic_0001>

<bundles_post_ra>
// kernel: tpu_custom_call.1
= control target key start
LH: loop header
LB: loop body
LE: loop exit
PB: predicated region body
PF: predicated region fallthrough
CT: control target
= control target key end

     0   :  { %10 = vsyncpa [#allocation3], 0  ;;  %s417_s0 = inlined_call_operand.vmem [shape: bf16[8,128], index: 0, kind: input, shape index: {}]   ;;  %s418_s1 = inlined_call_operand.vmem [shape: s32[8,1], index: 1, kind: input, shape index: {}]   ;;  %s419_s2 = inlined_call_operand.vmem [shape: bf16[8,128], index: 2, kind: input, shape index: {}]   ;;  %s420_s3 = inlined_call_operand.hbm [shape: bf16[128,128], index: 3, kind: input, shape index: {}]   ;;  %s421_s4 = inlined_call_operand.vmem [shape: f32[1,128], index: 4, kind: input, shape index: {}]   ;;  %s422_s5 = inlined_call_operand.hbm [shape: f32[1,8,128], index: 5, kind: output, shape index: {}]  }
   0x1   :  { %11 = vsyncpa [#allocation4], 0  ;;  %s22_s20 = sshll.u32 %s420_s3, 4  ;;  %s331_s21 = smov [#allocation2]   ;;  %s23_s20 = int_to_ptr.hbm [resolvable:$true] %s22_s20 }
   0x2   :  { %s24_s22 = sshll.u32 %s331_s21, 4  ;;  %s332_s23 = smov 64   ;;  %s25_s22 = int_to_ptr.vmem [resolvable:$true] %s24_s22 }
   0x3   :  { %s333_s24 = smov 4  }
   0x4   :  { %30 = dma.hbm_to_vmem [thread:$0]  %s23_s20, 1024, %s25_s22, [#allocation3], %s332_s23, %s332_s23, %s333_s24  }
   0x5   :  { %327 = dma.done.wait [#allocation3], 1024  }
   0x6   :  { %328 = vsyncadd [#allocation3], 4294966272  ;;  %v334_v0 = vmov 0   ;;  %v263_v1 = vld [vmem:[#allocation2 + $0x38] sm:$0xff]  ;;  %v127_v2 = vld [vmem:[%s418_s1] sm:$0xff]  ;;  %v130_v13 = vlaneseq  ;;  %vm335_vm2 = vmmov 1  }
   0x7   :  { %275 = vset.pattern.permute.xlu0 %v334_v0  ;;  %102 = vmatpush.bf16.xpose.msra.mxu0 %v263_v1  ;;  %v262_v3 = vld [vmem:[#allocation2 + $0x30] sm:$0xff]  ;;  %v261_v4 = vld [vmem:[#allocation2 + $0x28] sm:$0xff]  ;;  %v260_v5 = vld [vmem:[#allocation2 + $0x20] sm:$0xff]  ;;  %v336_v20 = vmov 0.0   ;;  %vm136_vm5 = vcmp.ge.s32.totalorder %v127_v2, 0  ;;  %vm175_vm7 = vcmask 7168  }
   0x8   :  { %133 = vperm.xlu0 %275, %v127_v2   ;;  %v259_v6 = vld [vmem:[#allocation2 + $0x18] sm:$0xff]  ;;  %v37_v7 = vld [vmem:[%s417_s0] sm:$0xf]  ;;  %v258_v9 = vld [vmem:[#allocation2 + $0x10] sm:$0xff]  ;;  %v380_v16 = vand.u32 127, %v130_v13  ;;  %v253_v35 = vsel %vm136_vm5, 1.0, %v336_v20 }
   0x9   :  { %v115_v8 = vunpack.c.l.bf16 %v37_v7  ;;  %v257_v11 = vld [vmem:[#allocation2 + $0x8] sm:$0xff]  ;;  %v256_v12 = vld [vmem:[#allocation2] sm:$0xff]  ;;  %s211_s8 = sshll.u32 %s422_s5, 4  ;;  %s212_s8 = int_to_ptr.hbm [resolvable:$true] %s211_s8 }
   0xa   :  { %v128_v14 = vld [vmem:[%s419_s2] sm:$0xf]  ;;  %vm198_vm12 = vcmp.eq.s32.totalorder %v380_v16, 1  ;;  %vm197_vm13 = vcmp.eq.s32.totalorder %v380_v16, 0 }
   0xb   :  { %v116_v10 = vmul.f32 %v115_v8, %v115_v8  ;;  %v129_v15 = vunpack.c.l.bf16 %v128_v14  ;;  %v276_v25 = vld [vmem:[%s421_s4] ss:$0 sm:$0xff]  ;;  %s337_s4 = smov [#allocation5]  }
   0xc   :  { %s209_s29 = sshll.u32 %s337_s4, 4  ;;  %s210_s29 = int_to_ptr.vmem [resolvable:$true] %s209_s29 }
   0xd   :  { %vm382_vm0 = vcmp.gt.f32.partialorder %v129_v15, 0.5 }
   0xf   :  { %103 = vmatpush.bf16.xpose.msra.mxu0 %v262_v3 }
  0x17   :  { %104 = vmatpush.bf16.xpose.msra.mxu0 %v261_v4 }
  0x1f   :  { %105 = vmatpush.bf16.xpose.msra.mxu0 %v260_v5 }
  0x27   :  { %106 = vmatpush.bf16.xpose.msra.mxu0 %v259_v6 }
  0x2f   :  { %107 = vmatpush.bf16.xpose.msra.mxu0 %v258_v9 }
  0x32   :  { %117 = vadd.xlane.f32.xlu0 %v116_v10 }
  0x37   :  { %108 = vmatpush.bf16.xpose.msra.mxu0 %v257_v11 }
  0x3f   :  { %109 = vmatpush.bf16.xpose.msra.mxu0 %v256_v12 }
  0x46   :  { %110 = vmatmul.bf16.vlgmr.msra.gmra.mxu0 %v37_v7 }
  0x7a   :  { %v134_v17 = vpop.permute.xlu0 %133 }
  0x7b   :  { %vm135_vm1 = vcmp.eq.s32.totalorder %v380_v16, %v134_v17 }
  0x7c   :  { %vm387_vm3 = vmxor %vm135_vm1, %vm335_vm2 }
  0x7d   :  { %vm144_vm4 = vmand %vm382_vm0, %vm387_vm3 }
  0x7e   :  { %v254_v21 = vsel %vm144_vm4, 1.0, %v336_v20 }
  0x7f   :  { %147 = vadd.xlane.f32.xlu1 %v254_v21 }
  0xa5   :  { %v118_v23 = vpop.xlane.xlu0 %117 }
  0xc3   :  { %v111_v22 = vpop.f32.mrf.mxu0 }
  0xc4   :  { %v120_v24 = vmul.f32 2.0, %v111_v22 }
  0xc6   :  { %v121_v26 = vsub.f32 %v118_v23, %v120_v24 }
  0xc8   :  { %v125_v27 = vadd.f32 %v276_v25, %v121_v26 }
  0xca   :  { %v126_v28 = vmax.f32 %v125_v27, 0.0 }
  0xcb   :  { %v113_v29 = vpop.f32.mrf.mxu0 }
  0xcc   :  { %v139_v30 = vsel %vm135_vm1, %v126_v28, 0.0  ;;  %v149_v31 = vsub.f32 1.0, %v126_v28 }
  0xcd   :  { %140 = vadd.xlane.f32.xlu2 %v139_v30 }
  0xce   :  { %v150_v32 = vmax.f32 %v149_v31, 0.0 }
  0xd0   :  { %v151_v33 = vsel %vm144_vm4, %v150_v32, 0.0 }
  0xd1   :  { %152 = vadd.xlane.f32.xlu1 %v151_v33 }
  0xf2   :  { %v148_v34 = vpop.xlane.xlu1 %147 }
  0xf3   :  { %vm154_vm6 = vcmp.gt.f32.partialorder %v148_v34, 0.0  ;;  %v157_v39 = vmax.f32 %v148_v34, 1.0 }
  0xf4   :  { %v255_v36 = vsel %vm154_vm6, 1.0, %v336_v20 }
  0xf5   :  { %v186_v37 = vadd.f32 %v255_v36, %v253_v35  ;;  %277 = vrcp.f32 %v157_v39  ;;  %vm163_vm8 = vweird.f32 %v157_v39  ;;  %v169_v44 = vand.u32 2147483648, %v157_v39 }
  0xf6   :  { %v167_v46 = vand.u32 2147483647, %v157_v39 }
  0xf7   :  { %v187_v38 = vsel %vm175_vm7, %v186_v37, 0.0  ;;  %v170_v47 = vor.u32 1.1754944e-38, %v169_v44 }
  0xf8   :  { %188 = vadd.xlane.f32.xlu1 %v187_v38  ;;  %vm168_vm11 = vcmp.eq.f32.partialorder %v167_v46, 8.507059e+37 }
  0xfb   :  { %v278_v40 = vpop.eup %277 }
  0xfc   :  { %v159_v41 = vmul.f32 %v278_v40, %v157_v39  ;;  %vm164_vm9 = vweird.f32 %v278_v40 }
  0xfd   :  { %vm165_vm10 = vmor %vm163_vm8, %vm164_vm9 }
  0xfe   :  { %v160_v42 = vsub.f32 1.0, %v159_v41 }
 0x100   :  { %v161_v43 = vmul.f32 %v278_v40, %v160_v42 }
 0x102   :  { %v162_v45 = vadd.f32 %v278_v40, %v161_v43 }
 0x104   :  { %v166_v48 = vsel %vm165_vm10, %v278_v40, %v162_v45 }
 0x105   :  { %v171_v49 = vsel %vm168_vm11, %v170_v47, %v166_v48 }
 0x140   :  { %v141_v52 = vpop.xlane.xlu2 %140 }
 0x144   :  { %v153_v50 = vpop.xlane.xlu1 %152 }
 0x145   :  { %v172_v51 = vmul.f32 %v171_v49, %v153_v50 }
 0x147   :  { %v173_v53 = vsel %vm154_vm6, %v172_v51, 0.0 }
 0x148   :  { %v174_v54 = vadd.f32 %v173_v53, %v141_v52 }
 0x14a   :  { %v176_v55 = vsel %vm175_vm7, %v174_v54, 0.0 }
 0x14b   :  { %177 = vadd.xlane.f32.xlu2 %v176_v55 }
 0x16b   :  { %v189_v56 = vpop.xlane.xlu1 %188 }
 0x16c   :  { %v190_v57 = vrot.slane %v189_v56, 4 }
 0x16e   :  { %v191_v58 = vadd.f32 %v190_v57, %v189_v56 }
 0x170   :  { %v192_v59 = vrot.slane %v191_v58, 2 }
 0x172   :  { %v193_v63 = vadd.f32 %v192_v59, %v191_v58 }
 0x174   :  { %v194_v2 = vrot.slane %v193_v63, 1 }
 0x176   :  { %v195_v5 = vadd.f32 %v194_v2, %v193_v63 }
 0x1be   :  { %v178_v60 = vpop.xlane.xlu2 %177 }
 0x1bf   :  { %v179_v61 = vrot.slane %v178_v60, 4 }
 0x1c1   :  { %v180_v62 = vadd.f32 %v179_v61, %v178_v60 }
 0x1c3   :  { %v181_v0 = vrot.slane %v180_v62, 2 }
 0x1c5   :  { %v182_v1 = vadd.f32 %v181_v0, %v180_v62 }
 0x1c7   :  { %v183_v3 = vrot.slane %v182_v1, 1 }
 0x1c9   :  { %v184_v4 = vadd.f32 %v183_v3, %v182_v1 }
 0x1cb   :  { %264 = vpush %v184_v4 }
 0x1cc   :  { %266 = vpush %v195_v5 }
 0x1fc   :  { %s265_s30 = spop %264 }
 0x1fd   :  { %v201_v6 = vstv %s265_s30  ;;  %s267_s9 = spop %266 }
 0x1fe   :  { %v199_v7 = vstv %s267_s9 }
 0x1ff   :  { %v200_v8 = vsel %vm198_vm12, %v199_v7, 0.0 }
 0x200   :  { %v202_v9 = vsel %vm197_vm13, %v201_v6, %v200_v8 }
 0x201   :  { %203 = vst [vmem:[#allocation5] sm:$0xff] %v202_v9 }
 0x202   :  { %214 = dma.vmem_to_hbm [thread:$0]  %s210_s29, 128, %s212_s8, [#allocation4]  }
 0x203   :  { %329 = dma.done.wait [#allocation4], 128  }
 0x204   :  { %330 = vsyncadd [#allocation4], 4294967168 }
 0x205   :  { %219 = vsyncpa [#allocation3], 1 }
 0x206   :  { %220 = vsyncpa [#allocation4], 1 }

</bundles_post_ra>
